<compile_context>
chip_gen: v6e
topology: v6e:2x2x1
jax: 0.10.0
libtpu: 0.0.40
codegen_flags: <defaults>
</compile_context>

<pallas_src>
import jax
import jax.numpy as jnp
from jax import lax
from jax.experimental import pallas as pl
from jax.experimental.pallas import tpu as pltpu


def _round_up(x: int, m: int) -> int:
    return ((x + m - 1) // m) * m


def _projection_kernel(x_ref, w_ref, b_ref, o_ref, acc_ref):
    # x_ref:   (tm, tk)  activations tile (compute dtype, e.g. bf16)
    # w_ref:   (tn, tk)  weight tile in PyTorch (out, in) layout
    # b_ref:   (1,  tn)  bias tile (f32), resident across the K axis
    # o_ref:   (tm, tn)  output tile
    # acc_ref: (tm, tn)  f32 accumulator scratch (persists across K steps)
    k = pl.program_id(2)

    @pl.when(k == 0)
    def _init():
        acc_ref[...] = jnp.zeros_like(acc_ref)

    # x @ w.T without materializing a transpose: contract dim 1 of x with
    # dim 1 of w on the MXU, accumulate in f32.
    acc_ref[...] += lax.dot_general(
        x_ref[...],
        w_ref[...],
        dimension_numbers=(((1,), (1,)), ((), ())),
        preferred_element_type=jnp.float32,
    )

    @pl.when(k == pl.num_programs(2) - 1)
    def _finalize():
        y = acc_ref[...] + b_ref[...]          # f32 bias add
        o_ref[...] = jnp.tanh(y).astype(o_ref.dtype)  # f32 tanh, then cast


def projection_forward(features, weight, bias, *, compute_dtype=jnp.bfloat16):
    """
    features: [M, K] float32
    weight:   [N, K] float32  (PyTorch nn.Linear weight: out_features x in_features)
    bias:     [N]    float32
    Returns tanh(features @ weight.T + bias), shape [M, N], dtype of `features`.
    """
    M, K = features.shape
    N, K2 = weight.shape
    assert K == K2 and bias.shape == (N,)

    # --- tile sizes -------------------------------------------------------
    # Lane dims (tn, tk) are multiples of 128; sublane dim (tm) multiple of 8.
    # 256-wide N/M tiles match the v6e/v7x 256x256 MXU and are fine on v5e.
    tm = min(256, _round_up(M, 8))
    tn = min(256, _round_up(N, 128))
    tk = min(512, _round_up(K, 128))

    Mp = _round_up(M, tm)
    Np = _round_up(N, tn)
    Kp = _round_up(K, tk)

    # --- prepare operands (bf16 compute inputs, f32 bias) -----------------
    # TODO(synk): in a real model, store the weight in bf16 once at init time
    # instead of casting per call.
    x = features.astype(compute_dtype)
    w = weight.astype(compute_dtype)
    b = bias.astype(jnp.float32).reshape(1, N)

    if (Mp, Kp) != (M, K):
        x = jnp.pad(x, ((0, Mp - M), (0, Kp - K)))
    if (Np, Kp) != (N, K):
        w = jnp.pad(w, ((0, Np - N), (0, Kp - K)))
    if Np != N:
        b = jnp.pad(b, ((0, 0), (0, Np - N)))

    grid = (Mp // tm, Np // tn, Kp // tk)

    # --- VMEM budget (double-buffered inputs/outputs + f32 accumulator) ---
    in_bytes = jnp.dtype(compute_dtype).itemsize
    out_bytes = jnp.dtype(features.dtype).itemsize
    vmem_est = (
        2 * (tm * tk + tn * tk) * in_bytes   # x, w double buffers
        + 2 * tn * 4                         # bias double buffer (f32)
        + 2 * tm * tn * out_bytes            # output double buffer
        + tm * tn * 4                        # accumulator scratch
    )
    vmem_limit = min(max(2 * vmem_est, 16 * 1024 * 1024), 32 * 1024 * 1024)

    out_padded = pl.pallas_call(
        _projection_kernel,
        out_shape=jax.ShapeDtypeStruct((Mp, Np), features.dtype),
        grid=grid,
        in_specs=[
            pl.BlockSpec((tm, tk), lambda i, j, k: (i, k)),   # activations
            pl.BlockSpec((tn, tk), lambda i, j, k: (j, k)),   # weight (out,in)
            pl.BlockSpec((1, tn), lambda i, j, k: (0, j)),    # bias, K-invariant
        ],
        out_specs=pl.BlockSpec((tm, tn), lambda i, j, k: (i, j)),
        scratch_shapes=[pltpu.VMEM((tm, tn), jnp.float32)],
        compiler_params=pltpu.CompilerParams(
            dimension_semantics=("parallel", "parallel", "arbitrary"),
            vmem_limit_bytes=vmem_limit,
        ),
    )(x, w, b)

    if (Mp, Np) != (M, N):
        out_padded = out_padded[:M, :N]
    return out_padded


if __name__ == "__main__":
    key = jax.random.PRNGKey(0)
    k_x, k_w, k_b = jax.random.split(key, 3)

    batch, hidden = 8, 32  # small shapes consistent with a hidden_size config

    features = jax.random.normal(k_x, (batch, hidden), dtype=jnp.float32)
    # Deterministic parameter init (synthetic; mimics nn.Linear's shape conventions).
    weight = jax.random.normal(k_w, (hidden, hidden), dtype=jnp.float32) * 0.02
    bias = jax.random.normal(k_b, (hidden,), dtype=jnp.float32) * 0.02

    out = projection_forward(features, weight, bias)
    out = jax.block_until_ready(out)
    assert out.shape == (batch, hidden)

    # Reference with the same bf16-input / f32-accumulate numerics as the kernel.
    x_bf = features.astype(jnp.bfloat16)
    w_bf = weight.astype(jnp.bfloat16)
    ref_bf = jnp.tanh(
        jnp.dot(x_bf, w_bf.T, preferred_element_type=jnp.float32) + bias
    )
    assert jnp.allclose(out, ref_bf, atol=1e-4, rtol=1e-4)

    # Sanity check against the full-f32 PyTorch-equivalent math (loose tol for bf16).
    ref_f32 = jnp.tanh(features @ weight.T + bias)
    assert jnp.allclose(out, ref_f32, atol=2e-2, rtol=2e-2)

    print("KERNEL_OK")
</pallas_src>

<mosaic_0001>
module attributes {stable_mosaic.version = 11 : i64} {
  func.func @_projection_kernel(%arg0: i32, %arg1: i32, %arg2: i32, %arg3: memref<8x128xbf16, #tpu.memory_space<vmem>>, %arg4: memref<128x128xbf16, #tpu.memory_space<vmem>>, %arg5: memref<1x128xf32, #tpu.memory_space<vmem>>, %arg6: memref<8x128xf32, #tpu.memory_space<vmem>>, %arg7: memref<8x128xf32, #tpu.memory_space<vmem>>) attributes {dimension_semantics = [#tpu.dimension_semantics<parallel>, #tpu.dimension_semantics<parallel>, #tpu.dimension_semantics<arbitrary>], iteration_bounds = array<i64: 1, 1, 1>, scalar_prefetch = 0 : i64, scratch_operands = 1 : i64, tpu.core_type = #tpu.core_type<tc>, window_params = [{transform_indices = @transform_0, window_bounds = array<i64: 8, 128>}, {transform_indices = @transform_1, window_bounds = array<i64: 128, 128>}, {transform_indices = @transform_2, window_bounds = array<i64: 1, 128>}, {transform_indices = @transform_3, window_bounds = array<i64: 8, 128>}]} {
    %c0_i32 = arith.constant 0 : i32
    %0 = arith.cmpi eq, %arg2, %c0_i32 : i32
    %1 = arith.extui %0 : i1 to i32
    %c0_i32_0 = arith.constant 0 : i32
    %2 = arith.cmpi ne, %1, %c0_i32_0 : i32
    scf.if %2 {
      %cst_10 = arith.constant 0.000000e+00 : f32
      %12 = vector.broadcast %cst_10 : f32 to vector<8x128xf32>
      %c0_11 = arith.constant 0 : index
      %c0_12 = arith.constant 0 : index
      %13 = vector.load %arg7[%c0_11, %c0_12] : memref<8x128xf32, #tpu.memory_space<vmem>>, vector<8x128xf32>
      tpu.vector_store %arg7[%c0_11, %c0_12], %12 {strides = array<i32>} : memref<8x128xf32, #tpu.memory_space<vmem>>, vector<8x128xf32>,
    } else {
    }
    %c0 = arith.constant 0 : index
    %c0_1 = arith.constant 0 : index
    %3 = vector.load %arg7[%c0, %c0_1] : memref<8x128xf32, #tpu.memory_space<vmem>>, vector<8x128xf32>
    %c0_2 = arith.constant 0 : index
    %c0_3 = arith.constant 0 : index
    %4 = vector.load %arg3[%c0_2, %c0_3] : memref<8x128xbf16, #tpu.memory_space<vmem>>, vector<8x128xbf16>
    %c0_4 = arith.constant 0 : index
    %c0_5 = arith.constant 0 : index
    %5 = vector.load %arg4[%c0_4, %c0_5] : memref<128x128xbf16, #tpu.memory_space<vmem>>, vector<128x128xbf16>
    %cst = arith.constant dense<0.000000e+00> : vector<8x128xf32>
    %6 = tpu.matmul %4, %5, %cst {dimension_numbers = #tpu.dot_dimension_numbers<[1], [1], [0], [0], [0, 0, 1, 0], [], []>} : vector<8x128xbf16>, vector<128x128xbf16>, vector<8x128xf32> -> vector<8x128xf32>
    %7 = arith.addf %3, %6 : vector<8x128xf32>
    %c0_6 = arith.constant 0 : index
    %c0_7 = arith.constant 0 : index
    %8 = vector.load %arg7[%c0_6, %c0_7] : memref<8x128xf32, #tpu.memory_space<vmem>>, vector<8x128xf32>
    tpu.vector_store %arg7[%c0_6, %c0_7], %7 {strides = array<i32>} : memref<8x128xf32, #tpu.memory_space<vmem>>, vector<8x128xf32>,
    %c0_i32_8 = arith.constant 0 : i32
    %9 = arith.cmpi eq, %arg2, %c0_i32_8 : i32
    %10 = arith.extui %9 : i1 to i32
    %c0_i32_9 = arith.constant 0 : i32
    %11 = arith.cmpi ne, %10, %c0_i32_9 : i32
    scf.if %11 {
      %c0_10 = arith.constant 0 : index
      %c0_11 = arith.constant 0 : index
      %12 = vector.load %arg7[%c0_10, %c0_11] : memref<8x128xf32, #tpu.memory_space<vmem>>, vector<8x128xf32>
      %c0_12 = arith.constant 0 : index
      %c0_13 = arith.constant 0 : index
      %13 = vector.load %arg5[%c0_12, %c0_13] : memref<1x128xf32, #tpu.memory_space<vmem>>, vector<1x128xf32>
      %14 = vector.broadcast %13 : vector<1x128xf32> to vector<8x128xf32>
      %15 = arith.addf %12, %14 : vector<8x128xf32>
      %16 = math.tanh %15 : vector<8x128xf32>
      %c0_14 = arith.constant 0 : index
      %c0_15 = arith.constant 0 : index
      %17 = vector.load %arg6[%c0_14, %c0_15] : memref<8x128xf32, #tpu.memory_space<vmem>>, vector<8x128xf32>
      tpu.vector_store %arg6[%c0_14, %c0_15], %16 {strides = array<i32>} : memref<8x128xf32, #tpu.memory_space<vmem>>, vector<8x128xf32>,
    } else {
    }
    return
  }
  func.func @transform_0(%arg0: i32, %arg1: i32, %arg2: i32) -> (i32, i32) {
    %c0_i32 = arith.constant 0 : i32
    return %arg0, %arg2 : i32, i32
  }
  func.func @transform_1(%arg0: i32, %arg1: i32, %arg2: i32) -> (i32, i32) {
    %c0_i32 = arith.constant 0 : i32
    return %arg1, %arg2 : i32, i32
  }
  func.func @transform_2(%arg0: i32, %arg1: i32, %arg2: i32) -> (i32, i32) {
    %c0_i32 = arith.constant 0 : i32
    %c0_i32_0 = arith.constant 0 : i32
    return %c0_i32, %arg1 : i32, i32
  }
  func.func @transform_3(%arg0: i32, %arg1: i32, %arg2: i32) -> (i32, i32) {
    %c0_i32 = arith.constant 0 : i32
    return %arg0, %arg1 : i32, i32
  }
}

</mosaic_0001>

<bundles_post_ra>
// kernel: tpu_custom_call.1
= control target key start
LH: loop header
LB: loop body
LE: loop exit
PB: predicated region body
PF: predicated region fallthrough
CT: control target
= control target key end

     0   :  { %8 = vsyncpa [#allocation4], 0  ;;  %s345_s0 = inlined_call_operand.hbm [shape: bf16[8,128], index: 0, kind: input, shape index: {}]   ;;  %s346_s1 = inlined_call_operand.hbm [shape: bf16[128,128], index: 1, kind: input, shape index: {}]   ;;  %s347_s2 = inlined_call_operand.vmem [shape: f32[1,128], index: 2, kind: input, shape index: {}]   ;;  %s348_s3 = inlined_call_operand.hbm [shape: f32[8,128], index: 3, kind: output, shape index: {}]  }
   0x1   :  { %9 = vsyncpa [#allocation7], 0 }
   0x2   :  { %10 = vsyncpa [#allocation5], 0  ;;  %s306_s12 = smov [#allocation3]   ;;  %s307_s14 = smov [#allocation6]  }
   0x3   :  { %s17_s13 = sshll.u32 %s306_s12, 4  ;;  %s26_s15 = sshll.u32 %s307_s14, 4  ;;  %s18_s13 = int_to_ptr.vmem [resolvable:$true] %s17_s13  ;;  %s27_s15 = int_to_ptr.vmem [resolvable:$true] %s26_s15 }
   0x4   :  { %s248_s16 = scalar_lea.vmem %s18_s13, 64  ;;  %p253_p1 = scmp.lt.s32.totalorder %s18_s13, %s18_s13 }
   0x5   :  { %p249_p0 = scmp.ne.s32.totalorder %s18_s13, %s248_s16  ;;  %p254_p2 = scmp.lt.s32.totalorder %s248_s16, %s248_s16 }
   0x7   :  { %p255_p3 = por %p254_p2, %p253_p1 }
   0x9   :  { %p256_p4 = pnand %p255_p3, %p249_p0 }
   0xb   :  { %259 = shalt.err (!%p256_p4)
}
   0xc   :  { %20 = dma.hbm_to_vmem [thread:$0]  %s345_s0, 64, %s18_s13, [#allocation4]  }
   0xd   :  { %s268_s19 = scalar_lea.vmem %s27_s15, 1024  ;;  %p273_p6 = scmp.lt.s32.totalorder %s27_s15, %s27_s15 }
   0xe   :  { %p269_p5 = scmp.ne.s32.totalorder %s27_s15, %s268_s19  ;;  %p274_p7 = scmp.lt.s32.totalorder %s268_s19, %s268_s19 }
  0x10   :  { %p275_p8 = por %p274_p7, %p273_p6 }
  0x12   :  { %p276_p9 = pnand %p275_p8, %p269_p5 }
  0x14   :  { %279 = shalt.err (!%p276_p9)
}
  0x15   :  { %s308_s20 = smov 64   ;;  %s309_s21 = smov 4  }
  0x16   :  { %32 = dma.hbm_to_vmem [thread:$0]  %s346_s1, 1024, %s27_s15, [#allocation7], %s308_s20, %s308_s20, %s309_s21  }
  0x17   :  { %300 = dma.done.wait [#allocation4], 64  }
  0x18   :  { %301 = vsyncadd [#allocation4], 4294967232 }
  0x19   :  { %302 = dma.done.wait [#allocation7], 1024  }
  0x1a   :  { %303 = vsyncadd [#allocation7], 4294966272  ;;  %v310_v0 = vmov 0.0   ;;  %vm311_vm0 = vmmov 0   ;;  %v230_v1 = vld [vmem:[#allocation6 + $0x38] sm:$0xff]   ;;  %v231_v2 = vld [vmem:[#allocation6 + $0x30] sm:$0xff]  }
  0x1b   :  { %203 = vmatprep.subr.bf16.mxu0 %v310_v0  ;;  %219 = vmatprep.mubr.msk.bf16.mxu0 %vm311_vm0, %v310_v0  ;;  %v232_v3 = vld [vmem:[#allocation6 + $0x28] sm:$0xff]   ;;  %v233_v4 = vld [vmem:[#allocation6 + $0x20] sm:$0xff]   ;;  %v234_v5 = vld [vmem:[#allocation6 + $0x18] sm:$0xff]   ;;  %s312_s24 = smov [#allocation8]  }
  0x1c   :  { %204 = vmatpush3.bf16.xpose.msra.mxu0 %v230_v1  ;;  %v235_v6 = vld [vmem:[#allocation6 + $0x10] sm:$0xff]   ;;  %v236_v7 = vld [vmem:[#allocation6 + $0x8] sm:$0xff]   ;;  %v237_v8 = vld [vmem:[#allocation6] sm:$0xff]   ;;  %s175_s25 = sshll.u32 %s312_s24, 4  ;;  %s176_s25 = int_to_ptr.vmem [resolvable:$true] %s175_s25 }
  0x1d   :  { %205 = vmatprep.subr.bf16.mxu0 %v310_v0  ;;  %v48_v9 = vld [vmem:[#allocation3] sm:$0xf]  ;;  %s280_s26 = scalar_lea.vmem %s176_s25, 128  ;;  %p285_p11 = scmp.lt.s32.totalorder %s176_s25, %s176_s25 }
  0x1e   :  { %v193_v10 = vld [vmem:[%s347_s2] ss:$0 sm:$0xff]  ;;  %p281_p10 = scmp.ne.s32.totalorder %s176_s25, %s280_s26  ;;  %p286_p12 = scmp.lt.s32.totalorder %s280_s26, %s280_s26 }
  0x20   :  { %p287_p13 = por %p286_p12, %p285_p11 }
  0x22   :  { %p288_p0 = pnand %p287_p13, %p281_p10 }
  0x24   :  { %206 = vmatpush3.bf16.xpose.msra.mxu0 %v231_v2 }
  0x25   :  { %207 = vmatprep.subr.bf16.mxu0 %v310_v0 }
  0x2c   :  { %208 = vmatpush3.bf16.xpose.msra.mxu0 %v232_v3 }
  0x2d   :  { %209 = vmatprep.subr.bf16.mxu0 %v310_v0 }
  0x34   :  { %210 = vmatpush3.bf16.xpose.msra.mxu0 %v233_v4 }
  0x35   :  { %211 = vmatprep.subr.bf16.mxu0 %v310_v0 }
  0x3c   :  { %212 = vmatpush3.bf16.xpose.msra.mxu0 %v234_v5 }
  0x3d   :  { %213 = vmatprep.subr.bf16.mxu0 %v310_v0 }
  0x44   :  { %214 = vmatpush3.bf16.xpose.msra.mxu0 %v235_v6 }
  0x45   :  { %215 = vmatprep.subr.bf16.mxu0 %v310_v0 }
  0x4c   :  { %216 = vmatpush3.bf16.xpose.msra.mxu0 %v236_v7 }
  0x4d   :  { %217 = vmatprep.subr.bf16.mxu0 %v310_v0 }
  0x54   :  { %218 = vmatpush3.bf16.xpose.msra.mxu0 %v237_v8 }
  0x5b   :  { %220 = vmatmul.mubr.bf16.vlgmr.msra.gmra.mxu0 %v48_v9 }
 0x11b   :  { %v147_v11 = vpop.f32.mrf.mxu0 }
 0x11c   :  { %v166_v12 = vadd.f32 %v193_v10, %v147_v11 }
 0x11d   :  { %v221_v13 = vpop.f32.mrf.mxu0 }
 0x11e   :  { %238 = vtanh.f32 %v166_v12 }
 0x11f   :  { %v150_v14 = vpop.f32.mrf.mxu0 }
 0x121   :  { %v222_v15 = vpop.f32.mrf.mxu0 }
 0x12b   :  { %v239_v16 = vpop.eup %238 }
 0x12c   :  { %168 = vst [vmem:[#allocation8] sm:$0xff] %v239_v16 }
 0x12d   :  { %291 = shalt.err (!%p288_p0)
}
 0x12e   :  { %178 = dma.vmem_to_hbm [thread:$0]  %s176_s25, 128, %s348_s3, [#allocation5]  }
 0x12f   :  { %304 = dma.done.wait [#allocation5], 128  }
 0x130   :  { %305 = vsyncadd [#allocation5], 4294967168 }
 0x131   :  { %182 = vsyncpa [#allocation4], 1 }
 0x132   :  { %183 = vsyncpa [#allocation7], 1 }
 0x133   :  { %184 = vsyncpa [#allocation5], 1 }

</bundles_post_ra>
